<compile_context>
chip_gen: v6e
topology: v6e:2x2x1
jax: 0.10.0
libtpu: 0.0.40
codegen_flags: <defaults>
</compile_context>

<pallas_src>
import jax
import jax.numpy as jnp
from jax import lax
from jax.experimental import pallas as pl
from jax.experimental.pallas import tpu as pltpu

# ---- model dims (from Net.__init__) ----
N_IN = 784
D1, D2, D3 = 1024, 4096, 10
BATCH = 2
LANES = 128                      # lane-dense working width for the 9/10-wide tail
MAX_TB = 512                     # batch tile: safe for v5e 16 MiB scoped VMEM

_PI = 3.141592653589793
_TWO_PI = 6.283185307179586
_HALF_PI = 1.5707963267948966
_INV_2PI = 0.15915494309189535


# -------- elementwise math helpers (only +,*,sqrt,floor,select -> always lower) -----
def _acos(z):
    """Divide-free Cephes-style acos for z in [-1, 1] (pre-clamped).
    |z| <= 0.5:  acos = pi/2 - asin(|z|);   |z| > 0.5: acos = 2*asin(sqrt((1-|z|)/2));
    negative z:  acos(z) = pi - acos(|z|)."""
    a = jnp.abs(z)
    big = a > 0.5
    x2 = jnp.where(big, 0.5 * (1.0 - a), a * a)
    w = jnp.where(big, jnp.sqrt(x2), a)
    p = ((((4.2163199048e-2 * x2 + 2.4181311049e-2) * x2
           + 4.5470025998e-2) * x2 + 7.4953002686e-2) * x2 + 1.6666752422e-1)
    asin_w = w + w * x2 * p
    acos_abs = jnp.where(big, 2.0 * asin_w, _HALF_PI - asin_w)
    return jnp.where(z < 0.0, _PI - acos_abs, acos_abs)


def _sincos(x):
    """sin/cos for arbitrary magnitude: single round-based range reduction to
    [-pi, pi], then fold to [-pi/2, pi/2] + Taylor."""
    k = jnp.floor(x * _INV_2PI + 0.5)
    y = x - k * _TWO_PI                                   # y in [-pi, pi]
    # sin: fold using sin(pi - y) = sin(-pi - y) = sin(y)
    ys = jnp.where(y > _HALF_PI, _PI - y, jnp.where(y < -_HALF_PI, -_PI - y, y))
    zs = ys * ys
    sin_v = ys * (1.0 + zs * (-1.0 / 6.0 + zs * (1.0 / 120.0
                  + zs * (-1.0 / 5040.0 + zs * (1.0 / 362880.0
                  + zs * (-1.0 / 39916800.0))))))
    # cos: even; fold |y| in [0,pi] -> [0,pi/2] using cos(a) = -cos(pi - a)
    a = jnp.abs(y)
    flip = a > _HALF_PI
    yc = jnp.where(flip, _PI - a, a)
    zc = yc * yc
    cos_v = 1.0 + zc * (-0.5 + zc * (1.0 / 24.0 + zc * (-1.0 / 720.0
                  + zc * (1.0 / 40320.0 + zc * (-1.0 / 3628800.0)))))
    cos_v = jnp.where(flip, -cos_v, cos_v)
    return sin_v, cos_v


# ================================ fused Net kernel ==================================
def net_kernel(sc_ref, x_ref, rots_ref, perm_ref, out_ref):
    # ---------------- cartesian_to_polar (only r and theta[:, :9] are live) ---------
    x = x_ref[...]                                        # (TB, 784) f32
    sq = x * x
    total = jnp.sum(sq, axis=-1, keepdims=True)           # (TB, 1)  == ||x||^2
    r0 = jnp.sqrt(total)                                  # ||x||

    # inclusive prefix sums of squares for lanes 0..15 (only 0..8 are live):
    # 4-step Hillis-Steele scan on one (TB,128) vreg (XLU rolls).
    sq0 = sq[:, :LANES]
    col = lax.broadcasted_iota(jnp.int32, sq0.shape, 1)
    p = sq0
    for sh in (1, 2, 4, 8):
        p = p + jnp.where(col >= sh, pltpu.roll(p, shift=sh, axis=1), 0.0)
    prefix_excl = p - sq0
    revsum = jnp.maximum(total - prefix_excl, 1e-30)      # sum_{j>=k} x_j^2
    ratio = jnp.clip(x[:, :LANES] * lax.rsqrt(revsum), -1.0, 1.0)
    theta = _acos(ratio)                                  # (TB,128); cols 0..8 used

    # ---------------- PolarLinear chain fc1 -> relu -> fc2 -> relu -> fc3 -----------
    s1 = sc_ref[0]
    s2 = sc_ref[1]
    s3 = sc_ref[2]
    r3 = jnp.maximum(jnp.maximum(r0 * s1, 0.0) * s2, 0.0) * s3
    rots = rots_ref[...]                                  # (3,128), zero beyond col 8
    t1 = jnp.maximum(theta + rots[0:1, :], 0.0)           # fc1 rotation + relu
    t2 = jnp.maximum(t1 + rots[1:2, :], 0.0)              # fc2 rotation + relu
    t3 = t2 + rots[2:3, :]                                # fc3: theta3 in cols 0..8

    # ---------------- polar_to_cartesian (n = 10), fully vectorized -----------------
    sin_t, cos_t = _sincos(t3)
    # inclusive cumprod of sin over lanes (valid for lanes 0..15) via 4 rolls.
    sp = sin_t
    for sh in (1, 2, 4, 8):
        sp = sp * jnp.where(col >= sh, pltpu.roll(sp, shift=sh, axis=1), 1.0)
    sp_excl = jnp.where(col == 0, 1.0, pltpu.roll(sp, shift=1, axis=1))

    # lane j sources:  1..7 -> cos_j*SP_j (out cols 8..2);  0 -> cos_0 (out col 9);
    #                  8 -> cos_8*SPexcl_8 (out col 0);     9 -> sin_8*SPexcl_8 (col 1)
    src_a = cos_t * sp
    src_b = cos_t * sp_excl
    src_c = pltpu.roll(sin_t * sp_excl, shift=1, axis=1)
    combined = jnp.where((col == 0) | (col == 8), src_b,
                         jnp.where(col == 9, src_c, src_a))
    # one constant lane-permutation matmul on the otherwise idle MXU; rows >= 10 of
    # perm are zero, so garbage lanes of `combined` cannot leak into the output.
    cart = jnp.dot(combined, perm_ref[...], preferred_element_type=jnp.float32)
    logits = r3 * cart                                    # (TB,128); lanes >= 10 are 0

    # ---------------- softmax over the 10 logits, whole-vreg ------------------------
    ocol = lax.broadcasted_iota(jnp.int32, out_ref.shape, 1)
    masked = jnp.where(ocol < D3, logits, -3.0e38)
    m = jnp.max(masked, axis=-1, keepdims=True)
    e = jnp.where(ocol < D3, jnp.exp(logits - m), 0.0)
    den = jnp.sum(e, axis=-1, keepdims=True)
    out_ref[...] = e * pl.reciprocal(den, approx=True)


# ================================ parameters & packing ==============================
def init_params(key):
    k1, k2, k3 = jax.random.split(key, 3)
    return {
        "scale1": jnp.ones((1,), jnp.float32),                   # torch.ones(1)
        "rot1": jax.random.normal(k1, (D1 - 1,), jnp.float32),   # torch.randn(1023)
        "scale2": jnp.ones((1,), jnp.float32),
        "rot2": jax.random.normal(k2, (D2 - 1,), jnp.float32),   # torch.randn(4095)
        "scale3": jnp.ones((1,), jnp.float32),
        "rot3": jax.random.normal(k3, (D3 - 1,), jnp.float32),   # torch.randn(9)
    }


def pack_params(params):
    """One-time packing (at init, not per forward):
    - only the first 9 rotations of each layer reach the output -> zero-pad them into
      a lane-dense (3,128) tile,
    - the three scale scalars become a (3,) SMEM scalar-prefetch vector,
    - the constant lane->output-column permutation matrix for polar_to_cartesian."""
    rots9 = jnp.zeros((3, LANES), jnp.float32)
    rots9 = rots9.at[0, :D3 - 1].set(params["rot1"][:D3 - 1])
    rots9 = rots9.at[1, :D3 - 1].set(params["rot2"][:D3 - 1])
    rots9 = rots9.at[2, :D3 - 1].set(params["rot3"][:D3 - 1])
    scales = jnp.concatenate(
        [params["scale1"], params["scale2"], params["scale3"]]).astype(jnp.float32)
    perm = jnp.zeros((LANES, LANES), jnp.float32)
    perm = perm.at[0, 9].set(1.0)                  # cos(t0)                -> col 9
    for j in range(1, 8):
        perm = perm.at[j, 9 - j].set(1.0)          # cos(t_j)*SP_j          -> col 9-j
    perm = perm.at[8, 0].set(1.0)                  # cos(t8)*SP_7           -> col 0
    perm = perm.at[9, 1].set(1.0)                  # sin(t8)*SP_7           -> col 1
    return rots9, scales, perm


# ================================ forward ===========================================
@jax.jit
def net_forward(x, rots9, scales, perm):
    x = x.astype(jnp.float32)
    b = x.shape[0]
    tb = b if b <= MAX_TB else MAX_TB
    bp = ((b + tb - 1) // tb) * tb
    if bp != b:
        x = jnp.pad(x, ((0, bp - b), (0, 0)))
    grid = (bp // tb,)

    probs = pl.pallas_call(
        net_kernel,
        out_shape=jax.ShapeDtypeStruct((bp, LANES), jnp.float32),
        grid_spec=pltpu.PrefetchScalarGridSpec(
            num_scalar_prefetch=1,                # scales -> SMEM
            grid=grid,
            in_specs=[
                pl.BlockSpec((tb, N_IN), lambda i, sc: (i, 0)),        # x tile
                pl.BlockSpec((3, LANES), lambda i, sc: (0, 0)),        # rotations
                pl.BlockSpec((LANES, LANES), lambda i, sc: (0, 0)),    # permutation
            ],
            out_specs=pl.BlockSpec((tb, LANES), lambda i, sc: (i, 0)),
        ),
        compiler_params=pltpu.CompilerParams(
            dimension_semantics=("parallel",)),   # batch axis -> both TCs on v7x
    )(scales, x, rots9, perm)
    return probs[:b, :D3]                         # (B, 10)


# ================================ pure-JAX reference =================================
@jax.jit
def net_reference(x, rot1, rot2, rot3, scale1, scale2, scale3):
    """Faithful (non-eliminated) JAX port of the PyTorch Net forward pass."""
    x = x.astype(jnp.float32)
    b, n = x.shape
    sq = x * x
    total = jnp.sum(sq, axis=1, keepdims=True)
    excl = jnp.cumsum(sq, axis=1) - sq
    revnorm = jnp.sqrt(total - excl)                          # ||x[:, k:]||
    theta = jnp.arccos(jnp.clip(x / revnorm, -1.0, 1.0))[:, :n - 1]
    eps = 1e-7
    theta = theta.at[:, -1].set(jnp.arctan2(x[:, 1] + eps, x[:, 0] + eps))
    r = jnp.sqrt(total[:, 0])
    # fc1 + relu
    r = r * scale1[0]
    theta = jnp.pad(theta, ((0, 0), (0, (D1 - 1) - (n - 1)))) + rot1
    r, theta = jnp.maximum(r, 0.0), jnp.maximum(theta, 0.0)
    # fc2 + relu
    r = r * scale2[0]
    theta = jnp.pad(theta, ((0, 0), (0, (D2 - 1) - (D1 - 1)))) + rot2
    r, theta = jnp.maximum(r, 0.0), jnp.maximum(theta, 0.0)
    # fc3
    r = r * scale3[0]
    theta = theta[:, :D3 - 1] + rot3
    # polar_to_cartesian, n = 10
    sin_prod = jnp.cumprod(jnp.sin(theta[:, :-1]), axis=1)    # (B, 8)
    cart = jnp.zeros((b, D3), jnp.float32)
    cart = cart.at[:, 0].set(r * jnp.cos(theta[:, -1]) * sin_prod[:, -1])
    cart = cart.at[:, 1].set(r * jnp.sin(theta[:, -1]) * sin_prod[:, -1])
    for k in range(2, D3 - 1):
        spk = jnp.cumprod(jnp.sin(theta[:, :D3 - k]), axis=1)[:, -1]
        cart = cart.at[:, k].set(r * jnp.cos(theta[:, D3 - k - 1]) * spk)
    cart = cart.at[:, D3 - 1].set(r * jnp.cos(theta[:, 0]))
    return jax.nn.softmax(cart, axis=1)


if __name__ == "__main__":
    key = jax.random.PRNGKey(0)
    kx, kp = jax.random.split(key)
    x = jax.random.normal(kx, (BATCH, N_IN), dtype=jnp.float32)
    params = init_params(kp)
    rots9, scales, perm = pack_params(params)

    out = net_forward(x, rots9, scales, perm)
    out = jax.block_until_ready(out)

    ref = net_reference(x, params["rot1"], params["rot2"], params["rot3"],
                        params["scale1"], params["scale2"], params["scale3"])
    ref = jax.block_until_ready(ref)

    assert out.shape == (BATCH, D3), out.shape
    assert bool(jnp.all(jnp.isfinite(out)))
    assert bool(jnp.allclose(out.sum(axis=1), 1.0, atol=2e-3))     # softmax rows sum to 1
    assert bool(jnp.allclose(out, ref, atol=2e-3)), float(jnp.max(jnp.abs(out - ref)))
    print("KERNEL_OK")
</pallas_src>

<mosaic_0001>
module attributes {stable_mosaic.version = 11 : i64} {
  func.func @net_kernel(%arg0: i32, %arg1: memref<3xf32, #tpu.memory_space<smem>>, %arg2: memref<2x784xf32, #tpu.memory_space<vmem>>, %arg3: memref<3x128xf32, #tpu.memory_space<vmem>>, %arg4: memref<128x128xf32, #tpu.memory_space<vmem>>, %arg5: memref<2x128xf32, #tpu.memory_space<vmem>>) attributes {dimension_semantics = [#tpu.dimension_semantics<parallel>], iteration_bounds = array<i64: 1>, scalar_prefetch = 1 : i64, scratch_operands = 0 : i64, tpu.core_type = #tpu.core_type<tc>, window_params = [{transform_indices = @transform_0, window_bounds = array<i64: 2, 784>}, {pipeline_mode = #tpu.pipeline_mode<synchronous>, transform_indices = @transform_1, window_bounds = array<i64: 3, 128>}, {pipeline_mode = #tpu.pipeline_mode<synchronous>, transform_indices = @transform_2, window_bounds = array<i64: 128, 128>}, {transform_indices = @transform_3, window_bounds = array<i64: 2, 128>}]} {
    %c0 = arith.constant 0 : index
    %c0_0 = arith.constant 0 : index
    %0 = vector.load %arg2[%c0, %c0_0] : memref<2x784xf32, #tpu.memory_space<vmem>>, vector<2x784xf32>
    %1 = arith.mulf %0, %0 : vector<2x784xf32>
    %cst = arith.constant dense<0.000000e+00> : vector<2xf32>
    %2 = vector.multi_reduction <add>, %1, %cst [1] : vector<2x784xf32> to vector<2xf32>
    %3 = vector.shape_cast %2 : vector<2xf32> to vector<2x1xf32>
    %4 = math.sqrt %3 : vector<2x1xf32>
    %5 = vector.extract_strided_slice %1 {offsets = [0, 0], sizes = [2, 128], strides = [1, 1]} : vector<2x784xf32> to vector<2x128xf32>
    %6 = tpu.iota {dimensions = array<i32: 1>} : vector<2x128xi32>
    %c1_i32 = arith.constant 1 : i32
    %7 = vector.broadcast %c1_i32 : i32 to vector<2x128xi32>
    %8 = arith.cmpi sge, %6, %7 : vector<2x128xi32>
    %c1_i32_1 = arith.constant 1 : i32
    %9 = tpu.dynamic_rotate %5 by %c1_i32_1 dim 1 : vector<2x128xf32>, i32 -> vector<2x128xf32>
    %cst_2 = arith.constant 0.000000e+00 : f32
    %10 = vector.broadcast %cst_2 : f32 to vector<2x128xf32>
    %11 = arith.select %8, %9, %10 : vector<2x128xi1>, vector<2x128xf32>
    %12 = arith.addf %5, %11 : vector<2x128xf32>
    %c2_i32 = arith.constant 2 : i32
    %13 = vector.broadcast %c2_i32 : i32 to vector<2x128xi32>
    %14 = arith.cmpi sge, %6, %13 : vector<2x128xi32>
    %c2_i32_3 = arith.constant 2 : i32
    %15 = tpu.dynamic_rotate %12 by %c2_i32_3 dim 1 : vector<2x128xf32>, i32 -> vector<2x128xf32>
    %cst_4 = arith.constant 0.000000e+00 : f32
    %16 = vector.broadcast %cst_4 : f32 to vector<2x128xf32>
    %17 = arith.select %14, %15, %16 : vector<2x128xi1>, vector<2x128xf32>
    %18 = arith.addf %12, %17 : vector<2x128xf32>
    %c4_i32 = arith.constant 4 : i32
    %19 = vector.broadcast %c4_i32 : i32 to vector<2x128xi32>
    %20 = arith.cmpi sge, %6, %19 : vector<2x128xi32>
    %c4_i32_5 = arith.constant 4 : i32
    %21 = tpu.dynamic_rotate %18 by %c4_i32_5 dim 1 : vector<2x128xf32>, i32 -> vector<2x128xf32>
    %cst_6 = arith.constant 0.000000e+00 : f32
    %22 = vector.broadcast %cst_6 : f32 to vector<2x128xf32>
    %23 = arith.select %20, %21, %22 : vector<2x128xi1>, vector<2x128xf32>
    %24 = arith.addf %18, %23 : vector<2x128xf32>
    %c8_i32 = arith.constant 8 : i32
    %25 = vector.broadcast %c8_i32 : i32 to vector<2x128xi32>
    %26 = arith.cmpi sge, %6, %25 : vector<2x128xi32>
    %c8_i32_7 = arith.constant 8 : i32
    %27 = tpu.dynamic_rotate %24 by %c8_i32_7 dim 1 : vector<2x128xf32>, i32 -> vector<2x128xf32>
    %cst_8 = arith.constant 0.000000e+00 : f32
    %28 = vector.broadcast %cst_8 : f32 to vector<2x128xf32>
    %29 = arith.select %26, %27, %28 : vector<2x128xi1>, vector<2x128xf32>
    %30 = arith.addf %24, %29 : vector<2x128xf32>
    %31 = arith.subf %30, %5 : vector<2x128xf32>
    %32 = vector.broadcast %3 : vector<2x1xf32> to vector<2x128xf32>
    %33 = arith.subf %32, %31 : vector<2x128xf32>
    %cst_9 = arith.constant 1.000000e-30 : f32
    %34 = vector.broadcast %cst_9 : f32 to vector<2x128xf32>
    %35 = arith.maximumf %33, %34 : vector<2x128xf32>
    %36 = vector.extract_strided_slice %0 {offsets = [0, 0], sizes = [2, 128], strides = [1, 1]} : vector<2x784xf32> to vector<2x128xf32>
    %37 = math.rsqrt %35 : vector<2x128xf32>
    %38 = arith.mulf %36, %37 : vector<2x128xf32>
    %cst_10 = arith.constant -1.000000e+00 : f32
    %cst_11 = arith.constant 1.000000e+00 : f32
    %39 = vector.broadcast %cst_10 : f32 to vector<2x128xf32>
    %40 = arith.maximumf %39, %38 : vector<2x128xf32>
    %41 = vector.broadcast %cst_11 : f32 to vector<2x128xf32>
    %42 = arith.minimumf %41, %40 : vector<2x128xf32>
    %43 = math.absf %42 : vector<2x128xf32>
    %cst_12 = arith.constant 5.000000e-01 : f32
    %44 = vector.broadcast %cst_12 : f32 to vector<2x128xf32>
    %45 = arith.cmpf ogt, %43, %44 : vector<2x128xf32>
    %cst_13 = arith.constant 1.000000e+00 : f32
    %46 = vector.broadcast %cst_13 : f32 to vector<2x128xf32>
    %47 = arith.subf %46, %43 : vector<2x128xf32>
    %cst_14 = arith.constant 5.000000e-01 : f32
    %48 = vector.broadcast %cst_14 : f32 to vector<2x128xf32>
    %49 = arith.mulf %48, %47 : vector<2x128xf32>
    %50 = arith.mulf %43, %43 : vector<2x128xf32>
    %51 = arith.select %45, %49, %50 : vector<2x128xi1>, vector<2x128xf32>
    %52 = math.sqrt %51 : vector<2x128xf32>
    %53 = arith.select %45, %52, %43 : vector<2x128xi1>, vector<2x128xf32>
    %cst_15 = arith.constant 4.216320e-02 : f32
    %54 = vector.broadcast %cst_15 : f32 to vector<2x128xf32>
    %55 = arith.mulf %54, %51 : vector<2x128xf32>
    %cst_16 = arith.constant 0.024181312 : f32
    %56 = vector.broadcast %cst_16 : f32 to vector<2x128xf32>
    %57 = arith.addf %55, %56 : vector<2x128xf32>
    %58 = arith.mulf %57, %51 : vector<2x128xf32>
    %cst_17 = arith.constant 0.0454700254 : f32
    %59 = vector.broadcast %cst_17 : f32 to vector<2x128xf32>
    %60 = arith.addf %58, %59 : vector<2x128xf32>
    %61 = arith.mulf %60, %51 : vector<2x128xf32>
    %cst_18 = arith.constant 0.0749530047 : f32
    %62 = vector.broadcast %cst_18 : f32 to vector<2x128xf32>
    %63 = arith.addf %61, %62 : vector<2x128xf32>
    %64 = arith.mulf %63, %51 : vector<2x128xf32>
    %cst_19 = arith.constant 0.166667521 : f32
    %65 = vector.broadcast %cst_19 : f32 to vector<2x128xf32>
    %66 = arith.addf %64, %65 : vector<2x128xf32>
    %67 = arith.mulf %53, %51 : vector<2x128xf32>
    %68 = arith.mulf %67, %66 : vector<2x128xf32>
    %69 = arith.addf %53, %68 : vector<2x128xf32>
    %cst_20 = arith.constant 2.000000e+00 : f32
    %70 = vector.broadcast %cst_20 : f32 to vector<2x128xf32>
    %71 = arith.mulf %70, %69 : vector<2x128xf32>
    %cst_21 = arith.constant 1.57079637 : f32
    %72 = vector.broadcast %cst_21 : f32 to vector<2x128xf32>
    %73 = arith.subf %72, %69 : vector<2x128xf32>
    %74 = arith.select %45, %71, %73 : vector<2x128xi1>, vector<2x128xf32>
    %cst_22 = arith.constant 0.000000e+00 : f32
    %75 = vector.broadcast %cst_22 : f32 to vector<2x128xf32>
    %76 = arith.cmpf olt, %42, %75 : vector<2x128xf32>
    %cst_23 = arith.constant 3.14159274 : f32
    %77 = vector.broadcast %cst_23 : f32 to vector<2x128xf32>
    %78 = arith.subf %77, %74 : vector<2x128xf32>
    %79 = arith.select %76, %78, %74 : vector<2x128xi1>, vector<2x128xf32>
    %c0_24 = arith.constant 0 : index
    %80 = memref.load %arg1[%c0_24] : memref<3xf32, #tpu.memory_space<smem>>
    %c1 = arith.constant 1 : index
    %81 = memref.load %arg1[%c1] : memref<3xf32, #tpu.memory_space<smem>>
    %c2 = arith.constant 2 : index
    %82 = memref.load %arg1[%c2] : memref<3xf32, #tpu.memory_space<smem>>
    %83 = vector.broadcast %80 : f32 to vector<2x1xf32>
    %84 = arith.mulf %4, %83 : vector<2x1xf32>
    %cst_25 = arith.constant 0.000000e+00 : f32
    %85 = vector.broadcast %cst_25 : f32 to vector<2x1xf32>
    %86 = arith.maximumf %84, %85 : vector<2x1xf32>
    %87 = vector.broadcast %81 : f32 to vector<2x1xf32>
    %88 = arith.mulf %86, %87 : vector<2x1xf32>
    %cst_26 = arith.constant 0.000000e+00 : f32
    %89 = vector.broadcast %cst_26 : f32 to vector<2x1xf32>
    %90 = arith.maximumf %88, %89 : vector<2x1xf32>
    %91 = vector.broadcast %82 : f32 to vector<2x1xf32>
    %92 = arith.mulf %90, %91 : vector<2x1xf32>
    %c0_27 = arith.constant 0 : index
    %c0_28 = arith.constant 0 : index
    %93 = vector.load %arg3[%c0_27, %c0_28] : memref<3x128xf32, #tpu.memory_space<vmem>>, vector<3x128xf32>
    %94 = vector.extract_strided_slice %93 {offsets = [0, 0], sizes = [1, 128], strides = [1, 1]} : vector<3x128xf32> to vector<1x128xf32>
    %95 = vector.broadcast %94 : vector<1x128xf32> to vector<2x128xf32>
    %96 = arith.addf %79, %95 : vector<2x128xf32>
    %cst_29 = arith.constant 0.000000e+00 : f32
    %97 = vector.broadcast %cst_29 : f32 to vector<2x128xf32>
    %98 = arith.maximumf %96, %97 : vector<2x128xf32>
    %99 = vector.extract_strided_slice %93 {offsets = [1, 0], sizes = [1, 128], strides = [1, 1]} : vector<3x128xf32> to vector<1x128xf32>
    %100 = vector.broadcast %99 : vector<1x128xf32> to vector<2x128xf32>
    %101 = arith.addf %98, %100 : vector<2x128xf32>
    %cst_30 = arith.constant 0.000000e+00 : f32
    %102 = vector.broadcast %cst_30 : f32 to vector<2x128xf32>
    %103 = arith.maximumf %101, %102 : vector<2x128xf32>
    %104 = vector.extract_strided_slice %93 {offsets = [2, 0], sizes = [1, 128], strides = [1, 1]} : vector<3x128xf32> to vector<1x128xf32>
    %105 = vector.broadcast %104 : vector<1x128xf32> to vector<2x128xf32>
    %106 = arith.addf %103, %105 : vector<2x128xf32>
    %cst_31 = arith.constant 0.159154937 : f32
    %107 = vector.broadcast %cst_31 : f32 to vector<2x128xf32>
    %108 = arith.mulf %106, %107 : vector<2x128xf32>
    %cst_32 = arith.constant 5.000000e-01 : f32
    %109 = vector.broadcast %cst_32 : f32 to vector<2x128xf32>
    %110 = arith.addf %108, %109 : vector<2x128xf32>
    %111 = math.floor %110 : vector<2x128xf32>
    %cst_33 = arith.constant 6.28318548 : f32
    %112 = vector.broadcast %cst_33 : f32 to vector<2x128xf32>
    %113 = arith.mulf %111, %112 : vector<2x128xf32>
    %114 = arith.subf %106, %113 : vector<2x128xf32>
    %cst_34 = arith.constant 1.57079637 : f32
    %115 = vector.broadcast %cst_34 : f32 to vector<2x128xf32>
    %116 = arith.cmpf ogt, %114, %115 : vector<2x128xf32>
    %cst_35 = arith.constant 3.14159274 : f32
    %117 = vector.broadcast %cst_35 : f32 to vector<2x128xf32>
    %118 = arith.subf %117, %114 : vector<2x128xf32>
    %cst_36 = arith.constant -1.57079637 : f32
    %119 = vector.broadcast %cst_36 : f32 to vector<2x128xf32>
    %120 = arith.cmpf olt, %114, %119 : vector<2x128xf32>
    %cst_37 = arith.constant -3.14159274 : f32
    %121 = vector.broadcast %cst_37 : f32 to vector<2x128xf32>
    %122 = arith.subf %121, %114 : vector<2x128xf32>
    %123 = arith.select %120, %122, %114 : vector<2x128xi1>, vector<2x128xf32>
    %124 = arith.select %116, %118, %123 : vector<2x128xi1>, vector<2x128xf32>
    %125 = arith.mulf %124, %124 : vector<2x128xf32>
    %cst_38 = arith.constant -2.50521079E-8 : f32
    %126 = vector.broadcast %cst_38 : f32 to vector<2x128xf32>
    %127 = arith.mulf %125, %126 : vector<2x128xf32>
    %cst_39 = arith.constant 2.75573188E-6 : f32
    %128 = vector.broadcast %cst_39 : f32 to vector<2x128xf32>
    %129 = arith.addf %128, %127 : vector<2x128xf32>
    %130 = arith.mulf %125, %129 : vector<2x128xf32>
    %cst_40 = arith.constant -1.98412701E-4 : f32
    %131 = vector.broadcast %cst_40 : f32 to vector<2x128xf32>
    %132 = arith.addf %131, %130 : vector<2x128xf32>
    %133 = arith.mulf %125, %132 : vector<2x128xf32>
    %cst_41 = arith.constant 0.00833333377 : f32
    %134 = vector.broadcast %cst_41 : f32 to vector<2x128xf32>
    %135 = arith.addf %134, %133 : vector<2x128xf32>
    %136 = arith.mulf %125, %135 : vector<2x128xf32>
    %cst_42 = arith.constant -0.166666672 : f32
    %137 = vector.broadcast %cst_42 : f32 to vector<2x128xf32>
    %138 = arith.addf %137, %136 : vector<2x128xf32>
    %139 = arith.mulf %125, %138 : vector<2x128xf32>
    %cst_43 = arith.constant 1.000000e+00 : f32
    %140 = vector.broadcast %cst_43 : f32 to vector<2x128xf32>
    %141 = arith.addf %140, %139 : vector<2x128xf32>
    %142 = arith.mulf %124, %141 : vector<2x128xf32>
    %143 = math.absf %114 : vector<2x128xf32>
    %cst_44 = arith.constant 1.57079637 : f32
    %144 = vector.broadcast %cst_44 : f32 to vector<2x128xf32>
    %145 = arith.cmpf ogt, %143, %144 : vector<2x128xf32>
    %cst_45 = arith.constant 3.14159274 : f32
    %146 = vector.broadcast %cst_45 : f32 to vector<2x128xf32>
    %147 = arith.subf %146, %143 : vector<2x128xf32>
    %148 = arith.select %145, %147, %143 : vector<2x128xi1>, vector<2x128xf32>
    %149 = arith.mulf %148, %148 : vector<2x128xf32>
    %cst_46 = arith.constant -2.755732E-7 : f32
    %150 = vector.broadcast %cst_46 : f32 to vector<2x128xf32>
    %151 = arith.mulf %149, %150 : vector<2x128xf32>
    %cst_47 = arith.constant 2.48015876E-5 : f32
    %152 = vector.broadcast %cst_47 : f32 to vector<2x128xf32>
    %153 = arith.addf %152, %151 : vector<2x128xf32>
    %154 = arith.mulf %149, %153 : vector<2x128xf32>
    %cst_48 = arith.constant -0.00138888892 : f32
    %155 = vector.broadcast %cst_48 : f32 to vector<2x128xf32>
    %156 = arith.addf %155, %154 : vector<2x128xf32>
    %157 = arith.mulf %149, %156 : vector<2x128xf32>
    %cst_49 = arith.constant 0.0416666679 : f32
    %158 = vector.broadcast %cst_49 : f32 to vector<2x128xf32>
    %159 = arith.addf %158, %157 : vector<2x128xf32>
    %160 = arith.mulf %149, %159 : vector<2x128xf32>
    %cst_50 = arith.constant -5.000000e-01 : f32
    %161 = vector.broadcast %cst_50 : f32 to vector<2x128xf32>
    %162 = arith.addf %161, %160 : vector<2x128xf32>
    %163 = arith.mulf %149, %162 : vector<2x128xf32>
    %cst_51 = arith.constant 1.000000e+00 : f32
    %164 = vector.broadcast %cst_51 : f32 to vector<2x128xf32>
    %165 = arith.addf %164, %163 : vector<2x128xf32>
    %cst_52 = arith.constant 0.000000e+00 : f32
    %166 = vector.broadcast %cst_52 : f32 to vector<2x128xf32>
    %167 = arith.subf %166, %165 : vector<2x128xf32>
    %168 = arith.select %145, %167, %165 : vector<2x128xi1>, vector<2x128xf32>
    %c1_i32_53 = arith.constant 1 : i32
    %169 = vector.broadcast %c1_i32_53 : i32 to vector<2x128xi32>
    %170 = arith.cmpi sge, %6, %169 : vector<2x128xi32>
    %c1_i32_54 = arith.constant 1 : i32
    %171 = tpu.dynamic_rotate %142 by %c1_i32_54 dim 1 : vector<2x128xf32>, i32 -> vector<2x128xf32>
    %cst_55 = arith.constant 1.000000e+00 : f32
    %172 = vector.broadcast %cst_55 : f32 to vector<2x128xf32>
    %173 = arith.select %170, %171, %172 : vector<2x128xi1>, vector<2x128xf32>
    %174 = arith.mulf %142, %173 : vector<2x128xf32>
    %c2_i32_56 = arith.constant 2 : i32
    %175 = vector.broadcast %c2_i32_56 : i32 to vector<2x128xi32>
    %176 = arith.cmpi sge, %6, %175 : vector<2x128xi32>
    %c2_i32_57 = arith.constant 2 : i32
    %177 = tpu.dynamic_rotate %174 by %c2_i32_57 dim 1 : vector<2x128xf32>, i32 -> vector<2x128xf32>
    %cst_58 = arith.constant 1.000000e+00 : f32
    %178 = vector.broadcast %cst_58 : f32 to vector<2x128xf32>
    %179 = arith.select %176, %177, %178 : vector<2x128xi1>, vector<2x128xf32>
    %180 = arith.mulf %174, %179 : vector<2x128xf32>
    %c4_i32_59 = arith.constant 4 : i32
    %181 = vector.broadcast %c4_i32_59 : i32 to vector<2x128xi32>
    %182 = arith.cmpi sge, %6, %181 : vector<2x128xi32>
    %c4_i32_60 = arith.constant 4 : i32
    %183 = tpu.dynamic_rotate %180 by %c4_i32_60 dim 1 : vector<2x128xf32>, i32 -> vector<2x128xf32>
    %cst_61 = arith.constant 1.000000e+00 : f32
    %184 = vector.broadcast %cst_61 : f32 to vector<2x128xf32>
    %185 = arith.select %182, %183, %184 : vector<2x128xi1>, vector<2x128xf32>
    %186 = arith.mulf %180, %185 : vector<2x128xf32>
    %c8_i32_62 = arith.constant 8 : i32
    %187 = vector.broadcast %c8_i32_62 : i32 to vector<2x128xi32>
    %188 = arith.cmpi sge, %6, %187 : vector<2x128xi32>
    %c8_i32_63 = arith.constant 8 : i32
    %189 = tpu.dynamic_rotate %186 by %c8_i32_63 dim 1 : vector<2x128xf32>, i32 -> vector<2x128xf32>
    %cst_64 = arith.constant 1.000000e+00 : f32
    %190 = vector.broadcast %cst_64 : f32 to vector<2x128xf32>
    %191 = arith.select %188, %189, %190 : vector<2x128xi1>, vector<2x128xf32>
    %192 = arith.mulf %186, %191 : vector<2x128xf32>
    %c0_i32 = arith.constant 0 : i32
    %193 = vector.broadcast %c0_i32 : i32 to vector<2x128xi32>
    %194 = arith.cmpi eq, %6, %193 : vector<2x128xi32>
    %c1_i32_65 = arith.constant 1 : i32
    %195 = tpu.dynamic_rotate %192 by %c1_i32_65 dim 1 : vector<2x128xf32>, i32 -> vector<2x128xf32>
    %cst_66 = arith.constant 1.000000e+00 : f32
    %196 = vector.broadcast %cst_66 : f32 to vector<2x128xf32>
    %197 = arith.select %194, %196, %195 : vector<2x128xi1>, vector<2x128xf32>
    %198 = arith.mulf %168, %192 : vector<2x128xf32>
    %199 = arith.mulf %168, %197 : vector<2x128xf32>
    %200 = arith.mulf %142, %197 : vector<2x128xf32>
    %c1_i32_67 = arith.constant 1 : i32
    %201 = tpu.dynamic_rotate %200 by %c1_i32_67 dim 1 : vector<2x128xf32>, i32 -> vector<2x128xf32>
    %c0_i32_68 = arith.constant 0 : i32
    %202 = vector.broadcast %c0_i32_68 : i32 to vector<2x128xi32>
    %203 = arith.cmpi eq, %6, %202 : vector<2x128xi32>
    %c8_i32_69 = arith.constant 8 : i32
    %204 = vector.broadcast %c8_i32_69 : i32 to vector<2x128xi32>
    %205 = arith.cmpi eq, %6, %204 : vector<2x128xi32>
    %206 = arith.ori %203, %205 : vector<2x128xi1>
    %c9_i32 = arith.constant 9 : i32
    %207 = vector.broadcast %c9_i32 : i32 to vector<2x128xi32>
    %208 = arith.cmpi eq, %6, %207 : vector<2x128xi32>
    %209 = arith.select %208, %201, %198 : vector<2x128xi1>, vector<2x128xf32>
    %210 = arith.select %206, %199, %209 : vector<2x128xi1>, vector<2x128xf32>
    %c0_70 = arith.constant 0 : index
    %c0_71 = arith.constant 0 : index
    %211 = vector.load %arg4[%c0_70, %c0_71] : memref<128x128xf32, #tpu.memory_space<vmem>>, vector<128x128xf32>
    %cst_72 = arith.constant dense<0.000000e+00> : vector<2x128xf32>
    %212 = tpu.matmul %210, %211, %cst_72 {dimension_numbers = #tpu.dot_dimension_numbers<[1], [0], [0], [1], [0, 0, 1, 1], [], []>} : vector<2x128xf32>, vector<128x128xf32>, vector<2x128xf32> -> vector<2x128xf32>
    %213 = vector.broadcast %92 : vector<2x1xf32> to vector<2x128xf32>
    %214 = arith.mulf %213, %212 : vector<2x128xf32>
    %215 = tpu.iota {dimensions = array<i32: 1>} : vector<2x128xi32>
    %c10_i32 = arith.constant 10 : i32
    %216 = vector.broadcast %c10_i32 : i32 to vector<2x128xi32>
    %217 = arith.cmpi slt, %215, %216 : vector<2x128xi32>
    %cst_73 = arith.constant -3.000000e+38 : f32
    %218 = vector.broadcast %cst_73 : f32 to vector<2x128xf32>
    %219 = arith.select %217, %214, %218 : vector<2x128xi1>, vector<2x128xf32>
    %cst_74 = arith.constant dense<0xFF800000> : vector<2xf32>
    %220 = vector.multi_reduction <maximumf>, %219, %cst_74 [1] : vector<2x128xf32> to vector<2xf32>
    %221 = vector.shape_cast %220 : vector<2xf32> to vector<2x1xf32>
    %c10_i32_75 = arith.constant 10 : i32
    %222 = vector.broadcast %c10_i32_75 : i32 to vector<2x128xi32>
    %223 = arith.cmpi slt, %215, %222 : vector<2x128xi32>
    %224 = vector.broadcast %221 : vector<2x1xf32> to vector<2x128xf32>
    %225 = arith.subf %214, %224 : vector<2x128xf32>
    %226 = math.exp %225 : vector<2x128xf32>
    %cst_76 = arith.constant 0.000000e+00 : f32
    %227 = vector.broadcast %cst_76 : f32 to vector<2x128xf32>
    %228 = arith.select %223, %226, %227 : vector<2x128xi1>, vector<2x128xf32>
    %cst_77 = arith.constant dense<0.000000e+00> : vector<2xf32>
    %229 = vector.multi_reduction <add>, %228, %cst_77 [1] : vector<2x128xf32> to vector<2xf32>
    %230 = vector.shape_cast %229 : vector<2xf32> to vector<2x1xf32>
    %231 = tpu.reciprocal %230 {approx = true} : vector<2x1xf32> -> vector<2x1xf32>
    %232 = vector.broadcast %231 : vector<2x1xf32> to vector<2x128xf32>
    %233 = arith.mulf %228, %232 : vector<2x128xf32>
    %c0_78 = arith.constant 0 : index
    %c0_79 = arith.constant 0 : index
    %234 = vector.load %arg5[%c0_78, %c0_79] : memref<2x128xf32, #tpu.memory_space<vmem>>, vector<2x128xf32>
    tpu.vector_store %arg5[%c0_78, %c0_79], %233 {strides = array<i32>} : memref<2x128xf32, #tpu.memory_space<vmem>>, vector<2x128xf32>,
    return
  }
  func.func @transform_0(%arg0: i32, %arg1: memref<3xf32, #tpu.memory_space<smem>>) -> (i32, i32) {
    %c0_i32 = arith.constant 0 : i32
    %c0_i32_0 = arith.constant 0 : i32
    return %arg0, %c0_i32 : i32, i32
  }
  func.func @transform_1(%arg0: i32, %arg1: memref<3xf32, #tpu.memory_space<smem>>) -> (i32, i32) {
    %c0_i32 = arith.constant 0 : i32
    %c0_i32_0 = arith.constant 0 : i32
    %c0_i32_1 = arith.constant 0 : i32
    return %c0_i32, %c0_i32_0 : i32, i32
  }
  func.func @transform_2(%arg0: i32, %arg1: memref<3xf32, #tpu.memory_space<smem>>) -> (i32, i32) {
    %c0_i32 = arith.constant 0 : i32
    %c0_i32_0 = arith.constant 0 : i32
    %c0_i32_1 = arith.constant 0 : i32
    return %c0_i32, %c0_i32_0 : i32, i32
  }
  func.func @transform_3(%arg0: i32, %arg1: memref<3xf32, #tpu.memory_space<smem>>) -> (i32, i32) {
    %c0_i32 = arith.constant 0 : i32
    %c0_i32_0 = arith.constant 0 : i32
    return %arg0, %c0_i32 : i32, i32
  }
}

</mosaic_0001>

<bundles_post_ra>
// kernel: net_forward.1
= control target key start
LH: loop header
LB: loop body
LE: loop exit
PB: predicated region body
PF: predicated region fallthrough
CT: control target
= control target key end

     0   :  { %s712_s0 = inlined_call_operand.vmem [shape: f32[3], index: 0, kind: input, shape index: {}]   ;;  %s713_s1 = inlined_call_operand.hbm [shape: f32[2,784], index: 1, kind: input, shape index: {}]   ;;  %s714_s2 = inlined_call_operand.hbm [shape: f32[3,128], index: 2, kind: input, shape index: {}]   ;;  %s715_s3 = inlined_call_operand.hbm [shape: f32[128,128], index: 3, kind: input, shape index: {}]   ;;  %s716_s4 = inlined_call_operand.hbm [shape: f32[2,128], index: 4, kind: output, shape index: {}]  }
   0x1   :  { %s9_s17 = sshll.u32 %s712_s0, 4  ;;  %s10_s17 = int_to_ptr.vmem [resolvable:$true] %s9_s17 }
   0x2   :  { %s484_s18 = scalar_lea.vmem %s10_s17, 16  ;;  %p489_p1 = scmp.lt.s32.totalorder %s10_s17, %s10_s17 }
   0x3   :  { %p485_p0 = scmp.ne.s32.totalorder %s10_s17, %s484_s18  ;;  %p490_p2 = scmp.lt.s32.totalorder %s484_s18, %s484_s18 }
   0x5   :  { %p491_p3 = por %p490_p2, %p489_p1 }
   0x7   :  { %p492_p4 = pnand %p491_p3, %p485_p0 }
   0x9   :  { %495 = shalt.err (!%p492_p4)  }
   0xa   :  { %s584_s19 = smov [#allocation3]  }
   0xb   :  { %12 = dma.vmem_to_smem %s10_s17, 16, %s584_s19, [#allocation2] }
   0xc   :  { %576 = dma.done.wait [#allocation2], 16 }
   0xd   :  { %577 = vsyncadd [#allocation2], 4294967280 }
   0xe   :  { %14 = sfence }
   0xf   :  { %15 = vsyncpa [#allocation5], 0 }
  0x10   :  { %16 = vsyncpa [#allocation8], 0 }
  0x11   :  { %17 = vsyncpa [#allocation6], 0  ;;  %s585_s20 = smov [#allocation7]   ;;  %s586_s22 = smov [#allocation4]  }
  0x12   :  { %s34_s21 = sshll.u32 %s585_s20, 4  ;;  %s24_s0 = sshll.u32 %s586_s22, 4  ;;  %s35_s21 = int_to_ptr.vmem [resolvable:$true] %s34_s21  ;;  %s25_s0 = int_to_ptr.vmem [resolvable:$true] %s24_s0 }
  0x13   :  { %s504_s23 = scalar_lea.vmem %s35_s21, 64  ;;  %p509_p6 = scmp.lt.s32.totalorder %s35_s21, %s35_s21 }
  0x14   :  { %p505_p5 = scmp.ne.s32.totalorder %s35_s21, %s504_s23  ;;  %p510_p7 = scmp.lt.s32.totalorder %s504_s23, %s504_s23 }
  0x16   :  { %p511_p8 = por %p510_p7, %p509_p6 }
  0x18   :  { %p512_p9 = pnand %p511_p8, %p505_p5 }
  0x1a   :  { %515 = shalt.err (!%p512_p9)
}
  0x1b   :  { %37 = dma.hbm_to_vmem [thread:$0]  %s714_s2, 64, %s35_s21, [#allocation8]  }
  0x1c   :  { %s524_s26 = scalar_lea.vmem %s25_s0, 224  ;;  %p529_p11 = scmp.lt.s32.totalorder %s25_s0, %s25_s0 }
  0x1d   :  { %p525_p10 = scmp.ne.s32.totalorder %s25_s0, %s524_s26  ;;  %p530_p12 = scmp.lt.s32.totalorder %s524_s26, %s524_s26 }
  0x1f   :  { %p531_p13 = por %p530_p12, %p529_p11 }
  0x21   :  { %p532_p0 = pnand %p531_p13, %p525_p10 }
  0x23   :  { %535 = shalt.err (!%p532_p0)
}
  0x24   :  { %27 = dma.hbm_to_vmem [thread:$0]  %s713_s1, 224, %s25_s0, [#allocation5]  }
  0x25   :  { %s587_s29 = smov [#allocation9]  }
  0x26   :  { %s43_s30 = sshll.u32 %s587_s29, 4  ;;  %s44_s30 = int_to_ptr.vmem [resolvable:$true] %s43_s30 }
  0x27   :  { %s544_s5 = scalar_lea.vmem %s44_s30, 2048  ;;  %p549_p2 = scmp.lt.s32.totalorder %s44_s30, %s44_s30 }
  0x28   :  { %p545_p1 = scmp.ne.s32.totalorder %s44_s30, %s544_s5  ;;  %p550_p3 = scmp.lt.s32.totalorder %s544_s5, %s544_s5 }
  0x2a   :  { %p551_p4 = por %p550_p3, %p549_p2 }
  0x2c   :  { %p552_p5 = pnand %p551_p4, %p545_p1 }
  0x2e   :  { %555 = shalt.err (!%p552_p5)
}
  0x2f   :  { %s588_s2 = smov 128   ;;  %s589_s6 = smov 8  }
  0x30   :  { %49 = dma.hbm_to_vmem [thread:$0]  %s715_s3, 2048, %s44_s30, [#allocation8], %s588_s2, %s588_s2, %s589_s6  }
  0x31   :  { %578 = dma.done.wait [#allocation5], 224  }
  0x32   :  { %579 = vsyncadd [#allocation5], 4294967072 }
  0x33   :  { %580 = dma.done.wait [#allocation8], 2112  }
  0x34   :  { %581 = vsyncadd [#allocation8], 4294965184  ;;  %v635_v0 = vld [vmem:[#allocation4] sm:$0xff]  ;;  %s590_s1 = smov 1   ;;  %v69_v2 = vlaneseq  ;;  %s591_s3 = smov 2   ;;  %vm105_vm2 = vcmask 1041408  }
  0x35   :  { %v61_v1 = vmul.f32 %v635_v0, %v635_v0  ;;  %v592_v7 = vmov 1983009808   ;;  %s593_s9 = smov 4   ;;  %v60_v21 = vld [vmem:[#allocation4 + $0x8] sm:$0x3f]  ;;  %vm117_vm3 = vcmask 123904  }
  0x36   :  { %v640_v3 = vand.u32 127, %v69_v2  ;;  %v67_v8 = vunpack.c.l.s4 %v592_v7  ;;  %v646_v10 = vshrl.u32 %v69_v2, 7  ;;  %v62_v23 = vmul.f32 %v60_v21, %v60_v21  ;;  %s189_s10 = sld [smem:[#allocation3]]  ;;  %s596_s13 = smov [#allocation10]  }
  0x37   :  { %132 = vrot.lane.b32.xlu0 %v61_v1, %s590_s1  ;;  %v65_v16 = vcombine.high %v61_v1, %v61_v1  ;;  %vm595_vm13 = vmmov 0   ;;  %s407_s11 = sld [smem:[#allocation3 + $0x1]]  ;;  %s396_s14 = sshll.u32 %s596_s13, 4  ;;  %s397_s14 = int_to_ptr.vmem [resolvable:$true] %s396_s14 }
  0x38   :  { %vm131_vm0 = vcmp.ge.s32.totalorder %v640_v3, 1  ;;  %v68_v9 = vunpack.c.0.s8 %v67_v8  ;;  %vm136_vm1 = vcmp.ge.s32.totalorder %v640_v3, 2  ;;  %v82_v30 = vcombine.high %v62_v23, %v62_v23  ;;  %s408_s12 = sld [smem:[#allocation3 + $0x2]]  ;;  %s556_s15 = scalar_lea.vmem %s397_s14, 32 }
  0x39   :  { %vm141_vm4 = vcmp.ge.s32.totalorder %v640_v3, 4  ;;  %vm146_vm5 = vcmp.ge.s32.totalorder %v640_v3, 8  ;;  %vm274_vm14 = vcmp.eq.s32.totalorder %v640_v3, 0  ;;  %vm283_vm15 = vcmp.eq.s32.totalorder %v640_v3, 8  ;;  %p557_p6 = scmp.ne.s32.totalorder %s397_s14, %s556_s15  ;;  %p561_p7 = scmp.lt.s32.totalorder %s397_s14, %s397_s14 }
  0x3a   :  { %v71_v13 = vsub.s32 %v68_v9, %v646_v10  ;;  %p562_p8 = scmp.lt.s32.totalorder %s556_s15, %s556_s15 }
  0x3c   :  { %v72_v15 = vrot.slane %v61_v1, %v71_v13  ;;  %v79_v18 = vrot.slane %v65_v16, %v71_v13  ;;  %v89_v27 = vrot.slane %v62_v23, %v71_v13  ;;  %v96_v34 = vrot.slane %v82_v30, %v71_v13  ;;  %v200_v13 = vld [vmem:[#allocation7] sm:$0x7]  ;;  %p563_p9 = por %p562_p8, %p561_p7 }
  0x3d   :  { %v209_v16 = vsub.s32 1, %v646_v10 }
  0x3e   :  { %v80_v17 = vcombine.high %v72_v15, %v72_v15  ;;  %v106_v19 = vsel %vm105_vm2, %v72_v15, 0.0  ;;  %v81_v24 = vcombine.high %v79_v18, %v79_v18  ;;  %v109_v25 = vsel %vm105_vm2, %v79_v18, 0.0  ;;  %p564_p10 = pnand %p563_p9, %p557_p6 }
  0x3f   :  { %v97_v31 = vcombine.high %v89_v27, %v89_v27  ;;  %v113_v32 = vsel %vm105_vm2, %v89_v27, 0.0  ;;  %v118_v37 = vsel %vm117_vm3, %v96_v34, 0.0  ;;  %v210_v21 = vrot.slane %v200_v13, %v209_v16  ;;  %v300_v16 = vld [vmem:[#allocation9 + $0x60] sm:$0xff] }
  0x40   :  { %v107_v20 = vsel %vm105_vm2, %v80_v17, 0.0  ;;  %v111_v28 = vsel %vm105_vm2, %v81_v24, 0.0 }
  0x41   :  { %v108_v22 = vadd.f32 %v107_v20, %v106_v19  ;;  %v115_v35 = vsel %vm105_vm2, %v97_v31, 0.0 }
  0x43   :  { %v110_v26 = vadd.f32 %v109_v25, %v108_v22  ;;  %v215_v22 = vsub.s32 2, %v646_v10 }
  0x45   :  { %v112_v29 = vadd.f32 %v111_v28, %v110_v26  ;;  %v216_v26 = vrot.slane %v200_v13, %v215_v22  ;;  %v298_v22 = vld [vmem:[#allocation9 + $0x50] sm:$0xff] }
  0x47   :  { %v114_v33 = vadd.f32 %v113_v32, %v112_v29 }
  0x49   :  { %v116_v36 = vadd.f32 %v115_v35, %v114_v33 }
  0x4b   :  { %v119_v38 = vadd.f32 %v118_v37, %v116_v36 }
  0xa9   :  { %v133_v4 = vpop.permute.xlu0 %132 }
  0xaa   :  { %v134_v5 = vsel %vm131_vm0, %v133_v4, 0.0 }
  0xab   :  { %v135_v6 = vadd.f32 %v134_v5, %v61_v1 }
  0xad   :  { %137 = vrot.lane.b32.xlu0 %v135_v6, %s591_s3 }
 0x11f   :  { %v138_v11 = vpop.permute.xlu0 %137 }
 0x120   :  { %v139_v12 = vsel %vm136_vm1, %v138_v11, 0.0  ;;  %v203_v11 = vsub.s32 0, %v646_v10 }
 0x121   :  { %v140_v14 = vadd.f32 %v139_v12, %v135_v6 }
 0x122   :  { %v204_v17 = vrot.slane %v200_v13, %v203_v11  ;;  %v302_v13 = vld [vmem:[#allocation9 + $0x70] sm:$0xff] }
 0x123   :  { %142 = vrot.lane.b32.xlu1 %v140_v14, %s593_s9 }
 0x147   :  { %120 = vadd.xlane.f32.xlu1 %v119_v38 }
 0x195   :  { %v143_v39 = vpop.permute.xlu1 %142 }
 0x196   :  { %v144_v40 = vsel %vm141_vm4, %v143_v39, 0.0 }
 0x197   :  { %v145_v41 = vadd.f32 %v144_v40, %v140_v14 }
 0x199   :  { %147 = vrot.lane.b32.xlu0 %v145_v41, %s589_s6 }
 0x1d0   :  { %v666_v46 = vpop.xlane.xlu1 %120 }
 0x1d1   :  { %vm124_vm3 = vcmp.eq.f32.partialorder %v666_v46, inf }
 0x20b   :  { %v148_v42 = vpop.permute.xlu0 %147 }
 0x20c   :  { %v149_v43 = vsel %vm146_vm5, %v148_v42, 0.0 }
 0x20d   :  { %v150_v44 = vadd.f32 %v149_v43, %v145_v41 }
 0x20f   :  { %v151_v45 = vsub.f32 %v150_v44, %v61_v1 }
 0x211   :  { %v152_v47 = vsub.f32 %v666_v46, %v151_v45 }
 0x213   :  { %v153_v48 = vmax.f32 %v152_v47, 1e-30 }
 0x215   :  { %474 = vrsqrt.f32 %v153_v48 }
 0x222   :  { %v475_v49 = vpop.eup %474 }
 0x223   :  { %v155_v50 = vmul.f32 %v475_v49, %v635_v0 }
 0x225   :  { %v406_v51 = vclamps-f32 %v155_v50, 1.0 }
 0x227   :  { %v158_v52 = vand.u32 2147483647, %v406_v51  ;;  %vm186_vm9 = vcmp.lt.f32.partialorder %v406_v51, 0.0 }
 0x229   :  { %v160_v53 = vsub.f32 1.0, %v158_v52  ;;  %v162_v55 = vmul.f32 %v158_v52, %v158_v52  ;;  %vm159_vm6 = vcmp.gt.f32.partialorder %v158_v52, 0.5 }
 0x22b   :  { %v161_v54 = vmul.f32 0.5, %v160_v53 }
 0x22d   :  { %v163_v56 = vsel %vm159_vm6, %v161_v54, %v162_v55 }
 0x22e   :  { %476 = vrsqrt.f32 %v163_v56  ;;  %v172_v57 = vmul.f32 0.0421632, %v163_v56  ;;  %vm166_vm7 = vcmp.eq.f32.partialorder %v163_v56, inf  ;;  %v169_v2 = vand.u32 2147483648, %v163_v56 }
 0x22f   :  { %vm168_vm8 = vcmp.eq.f32.partialorder %v163_v56, 0.0  ;;  %478 = vrsqrt.f32 %v666_v46 }
 0x230   :  { %v173_v58 = vadd.f32 0.024181312, %v172_v57 }
 0x232   :  { %v174_v59 = vmul.f32 %v173_v58, %v163_v56 }
 0x234   :  { %v175_v60 = vadd.f32 0.045470025, %v174_v59 }
 0x236   :  { %v176_v61 = vmul.f32 %v175_v60, %v163_v56 }
 0x238   :  { %v177_v62 = vadd.f32 0.074953005, %v176_v61 }
 0x23a   :  { %v178_v0 = vmul.f32 %v177_v62, %v163_v56 }
 0x23b   :  { %v477_v63 = vpop.eup %476 }
 0x23c   :  { %v165_v1 = vmul.f32 %v477_v63, %v163_v56  ;;  %v179_v7 = vadd.f32 0.16666752, %v178_v0 }
 0x23e   :  { %v167_v4 = vsel %vm166_vm7, %v163_v56, %v165_v1 }
 0x23f   :  { %v170_v5 = vsel %vm168_vm8, %v169_v2, %v167_v4 }
 0x240   :  { %v171_v6 = vsel %vm159_vm6, %v170_v5, %v158_v52 }
 0x241   :  { %v180_v8 = vmul.f32 %v171_v6, %v163_v56 }
 0x243   :  { %v181_v9 = vmul.f32 %v180_v8, %v179_v7 }
 0x245   :  { %v182_v12 = vadd.f32 %v181_v9, %v171_v6  ;;  %v303_v9 = vld [vmem:[#allocation9 + $0x78] sm:$0xff] }
 0x247   :  { %v183_v14 = vmul.f32 2.0, %v182_v12  ;;  %v184_v15 = vsub.f32 1.5707964, %v182_v12  ;;  %v594_v12 = vmov 0.0  }
 0x248   :  { %426 = vmatprep.subr.mxu0 %v594_v12  ;;  %458 = vmatprep.mubr.msk.f32.mxu0 %vm595_vm13, %v594_v12 }
 0x249   :  { %v185_v18 = vsel %vm159_vm6, %v183_v14, %v184_v15  ;;  %427 = vmatpush3.msra.mxu0 %v303_v9  ;;  %v301_v14 = vld [vmem:[#allocation9 + $0x68] sm:$0xff] }
 0x24a   :  { %v187_v19 = vsub.f32 3.1415927, %v185_v18  ;;  %428 = vmatprep.subr.mxu0 %v594_v12 }
 0x24b   :  { %429 = vmatpush3.msra.mxu0 %v302_v13 }
 0x24c   :  { %v188_v20 = vsel %vm186_vm9, %v187_v19, %v185_v18  ;;  %430 = vmatprep.subr.mxu0 %v594_v12  ;;  %v299_v19 = vld [vmem:[#allocation9 + $0x58] sm:$0xff] }
 0x24d   :  { %v205_v23 = vadd.f32 %v204_v17, %v188_v20  ;;  %431 = vmatpush3.msra.mxu0 %v301_v14 }
 0x24e   :  { %432 = vmatprep.subr.mxu0 %v594_v12 }
 0x24f   :  { %v206_v24 = vmax.f32 %v205_v23, 0.0  ;;  %433 = vmatpush3.msra.mxu0 %v300_v16 }
 0x250   :  { %434 = vmatprep.subr.mxu0 %v594_v12 }
 0x251   :  { %v211_v25 = vadd.f32 %v210_v21, %v206_v24  ;;  %435 = vmatpush3.msra.mxu0 %v299_v19  ;;  %v297_v24 = vld [vmem:[#allocation9 + $0x48] sm:$0xff] }
 0x252   :  { %436 = vmatprep.subr.mxu0 %v594_v12 }
 0x253   :  { %v212_v27 = vmax.f32 %v211_v25, 0.0  ;;  %437 = vmatpush3.msra.mxu0 %v298_v22  ;;  %v296_v25 = vld [vmem:[#allocation9 + $0x40] sm:$0xff] }
 0x254   :  { %438 = vmatprep.subr.mxu0 %v594_v12 }
 0x255   :  { %v217_v28 = vadd.f32 %v216_v26, %v212_v27  ;;  %439 = vmatpush3.msra.mxu0 %v297_v24  ;;  %v295_v26 = vld [vmem:[#allocation9 + $0x38] sm:$0xff]  ;;  %v294_v27 = vld [vmem:[#allocation9 + $0x30] sm:$0xff] }
 0x256   :  { %440 = vmatprep.subr.mxu0 %v594_v12 }
 0x257   :  { %v218_v29 = vmul.f32 0.15915494, %v217_v28  ;;  %441 = vmatpush3.msra.mxu0 %v296_v25 }
 0x258   :  { %442 = vmatprep.subr.mxu0 %v594_v12 }
 0x259   :  { %v219_v30 = vadd.f32 0.5, %v218_v29  ;;  %443 = vmatpush3.msra.mxu0 %v295_v26  ;;  %v292_v29 = vld [vmem:[#allocation9 + $0x20] sm:$0xff] }
 0x25a   :  { %444 = vmatprep.subr.mxu0 %v594_v12 }
 0x25b   :  { %v220_v31 = vfloor.f32 %v219_v30  ;;  %445 = vmatpush3.msra.mxu0 %v294_v27  ;;  %v291_v30 = vld [vmem:[#allocation9 + $0x18] sm:$0xff] }
 0x25c   :  { %446 = vmatprep.subr.mxu0 %v594_v12 }
 0x25d   :  { %v221_v32 = vmul.f32 6.2831855, %v220_v31  ;;  %v290_v31 = vld [vmem:[#allocation9 + $0x10] sm:$0xff] }
 0x25f   :  { %v222_v33 = vsub.f32 %v217_v28, %v221_v32  ;;  %v293_v28 = vld [vmem:[#allocation9 + $0x28] sm:$0xff] }
 0x260   :  { %447 = vmatpush3.msra.mxu0 %v293_v28  ;;  %v289_v32 = vld [vmem:[#allocation9 + $0x8] sm:$0xff] }
 0x261   :  { %v224_v34 = vsub.f32 3.1415927, %v222_v33  ;;  %vm225_vm10 = vcmp.lt.f32.partialorder %v222_v33, -1.5707964  ;;  %v226_v35 = vsub.f32 -3.1415927, %v222_v33  ;;  %448 = vmatprep.subr.mxu0 %v594_v12 }
 0x262   :  { %vm223_vm11 = vcmp.gt.f32.partialorder %v222_v33, 1.5707964  ;;  %v241_v59 = vand.u32 2147483647, %v222_v33  ;;  %449 = vmatpush3.msra.mxu0 %v292_v29 }
 0x263   :  { %v227_v36 = vsel %vm225_vm10, %v226_v35, %v222_v33  ;;  %450 = vmatprep.subr.mxu0 %v594_v12  ;;  %v288_v33 = vld [vmem:[#allocation9] sm:$0xff] }
 0x264   :  { %v228_v37 = vsel %vm223_vm11, %v224_v34, %v227_v36  ;;  %v243_v60 = vsub.f32 3.1415927, %v241_v59  ;;  %vm242_vm12 = vcmp.gt.f32.partialorder %v241_v59, 1.5707964  ;;  %451 = vmatpush3.msra.mxu0 %v291_v30 }
 0x265   :  { %v229_v38 = vmul.f32 %v228_v37, %v228_v37  ;;  %452 = vmatprep.subr.mxu0 %v594_v12 }
 0x266   :  { %v244_v61 = vsel %vm242_vm12, %v243_v60, %v241_v59  ;;  %453 = vmatpush3.msra.mxu0 %v290_v31 }
 0x267   :  { %v230_v39 = vmul.f32 -2.5052108e-08, %v229_v38  ;;  %v245_v62 = vmul.f32 %v244_v61, %v244_v61  ;;  %454 = vmatprep.subr.mxu0 %v594_v12 }
 0x268   :  { %455 = vmatpush3.msra.mxu0 %v289_v32 }
 0x269   :  { %v231_v10 = vadd.f32 2.7557319e-06, %v230_v39  ;;  %v246_v63 = vmul.f32 -2.755732e-07, %v245_v62  ;;  %456 = vmatprep.subr.mxu0 %v594_v12 }
 0x26a   :  { %457 = vmatpush3.msra.mxu0 %v288_v33 }
 0x26b   :  { %v232_v40 = vmul.f32 %v231_v10, %v229_v38  ;;  %v247_v1 = vadd.f32 2.4801588e-05, %v246_v63 }
 0x26d   :  { %v233_v41 = vadd.f32 -0.0001984127, %v232_v40  ;;  %v248_v2 = vmul.f32 %v247_v1, %v245_v62  ;;  %v479_v40 = vpop.eup %478 }
 0x26f   :  { %v234_v42 = vmul.f32 %v233_v41, %v229_v38  ;;  %v249_v0 = vadd.f32 -0.0013888889, %v248_v2  ;;  %v123_v41 = vmul.f32 %v479_v40, %v666_v46 }
 0x271   :  { %v235_v43 = vadd.f32 0.008333334, %v234_v42  ;;  %v250_v4 = vmul.f32 %v249_v0, %v245_v62  ;;  %v127_v42 = vand.u32 2147483648, %v666_v46 }
 0x273   :  { %v236_v44 = vmul.f32 %v235_v43, %v229_v38  ;;  %v251_v5 = vadd.f32 0.041666668, %v250_v4  ;;  %v125_v43 = vsel %vm124_vm3, %v666_v46, %v123_v41 }
 0x275   :  { %v237_v45 = vadd.f32 -0.16666667, %v236_v44  ;;  %v252_v6 = vmul.f32 %v251_v5, %v245_v62 }
 0x277   :  { %v238_v47 = vmul.f32 %v237_v45, %v229_v38  ;;  %v253_v7 = vadd.f32 -0.5, %v252_v6  ;;  %v192_v45 = vstv %s189_s10 }
 0x279   :  { %v239_v48 = vadd.f32 1.0, %v238_v47  ;;  %v254_v8 = vmul.f32 %v253_v7, %v245_v62 }
 0x27b   :  { %v676_v49 = vmul.f32 %v239_v48, %v228_v37  ;;  %v255_v11 = vadd.f32 1.0, %v254_v8 }
 0x27d   :  { %258 = vrot.lane.b32.xlu0 %v676_v49, %s590_s1  ;;  %v256_v15 = vsub.f32 0.0, %v255_v11 }
 0x27f   :  { %v257_v21 = vsel %vm242_vm12, %v256_v15, %v255_v11 }
 0x2ef   :  { %v259_v50 = vpop.permute.xlu0 %258 }
 0x2f0   :  { %v260_v51 = vsel %vm131_vm0, %v259_v50, 1.0  ;;  %vm285_vm0 = vcmp.eq.s32.totalorder %v640_v3, 9 }
 0x2f1   :  { %v261_v52 = vmul.f32 %v260_v51, %v676_v49 }
 0x2f3   :  { %262 = vrot.lane.b32.xlu0 %v261_v52, %s591_s3 }
 0x365   :  { %v263_v53 = vpop.permute.xlu0 %262 }
 0x366   :  { %v264_v54 = vsel %vm136_vm1, %v263_v53, 1.0  ;;  %vm284_vm1 = vmor %vm274_vm14, %vm283_vm15 }
 0x367   :  { %v265_v55 = vmul.f32 %v264_v54, %v261_v52  ;;  %v198_v52 = vstv %s408_s12 }
 0x369   :  { %266 = vrot.lane.b32.xlu0 %v265_v55, %s593_s9 }
 0x3db   :  { %v267_v56 = vpop.permute.xlu0 %266 }
 0x3dc   :  { %v268_v57 = vsel %vm141_vm4, %v267_v56, 1.0  ;;  %vm126_vm4 = vcmp.eq.f32.partialorder %v666_v46, 0.0 }
 0x3dd   :  { %v269_v58 = vmul.f32 %v268_v57, %v265_v55  ;;  %v128_v44 = vsel %vm126_vm4, %v127_v42, %v125_v43 }
 0x3de   :  { %v193_v47 = vmul.f32 %v192_v45, %v128_v44 }
 0x3df   :  { %270 = vrot.lane.b32.xlu0 %v269_v58, %s589_s6 }
 0x3e0   :  { %v194_v48 = vmax.f32 %v193_v47, 0.0 }
 0x451   :  { %v271_v17 = vpop.permute.xlu0 %270 }
 0x452   :  { %v272_v18 = vsel %vm146_vm5, %v271_v17, 1.0  ;;  %vm375_vm5 = vcmp.lt.s32.totalorder %v640_v3, 10 }
 0x453   :  { %v273_v20 = vmul.f32 %v272_v18, %v269_v58 }
 0x455   :  { %275 = vrot.lane.b32.xlu0 %v273_v20, %s590_s1  ;;  %v278_v23 = vmul.f32 %v273_v20, %v257_v21 }
 0x4c7   :  { %v276_v34 = vpop.permute.xlu0 %275 }
 0x4c8   :  { %v277_v35 = vsel %vm274_vm14, 1.0, %v276_v34 }
 0x4c9   :  { %v279_v36 = vmul.f32 %v277_v35, %v257_v21  ;;  %v280_v37 = vmul.f32 %v277_v35, %v676_v49  ;;  %v195_v49 = vstv %s407_s11 }
 0x4ca   :  { %v196_v50 = vmul.f32 %v195_v49, %v194_v48 }
 0x4cb   :  { %281 = vrot.lane.b32.xlu0 %v280_v37, %s590_s1 }
 0x4cc   :  { %v197_v51 = vmax.f32 %v196_v50, 0.0 }
 0x4ce   :  { %v199_v53 = vmul.f32 %v198_v52, %v197_v51 }
 0x53d   :  { %v282_v38 = vpop.permute.xlu0 %281 }
 0x53e   :  { %v286_v39 = vsel %vm285_vm0, %v282_v38, %v278_v23 }
 0x53f   :  { %v287_v10 = vsel %vm284_vm1, %v279_v36, %v286_v39 }
 0x540   :  { %459 = vmatmul.mubr.f32.vlgmr.msra.gmra.mxu0 %v287_v10 }
 0x600   :  { %v370_v54 = vpop.f32.mrf.mxu0 }
 0x601   :  { %v374_v55 = vmul.f32 %v370_v54, %v199_v53 }
 0x602   :  { %v460_v56 = vpop.f32.mrf.mxu0 }
 0x603   :  { %v376_v57 = vsel %vm375_vm5, %v374_v55, -3e+38 }
 0x604   :  { %v377_v58 = vsel %vm105_vm2, %v376_v57, -inf }
 0x605   :  { %378 = vmax.xlane.f32.xlu0 %v377_v58 }
 0x68e   :  { %v379_v46 = vpop.xlane.xlu0 %378 }
 0x68f   :  { %v380_v59 = vsub.f32 %v374_v55, %v379_v46 }
 0x691   :  { %v381_v60 = vmul.f32 1.442695, %v380_v59 }
 0x693   :  { %480 = vpow2.f32 %v381_v60 }
 0x6a0   :  { %v481_v61 = vpop.eup %480 }
 0x6a1   :  { %v383_v62 = vsel %vm375_vm5, %v481_v61, 0.0 }
 0x6a2   :  { %v384_v63 = vsel %vm105_vm2, %v383_v62, 0.0 }
 0x6a3   :  { %385 = vadd.xlane.f32.xlu1 %v384_v63 }
 0x72c   :  { %v386_v1 = vpop.xlane.xlu1 %385 }
 0x72d   :  { %482 = vrcp.f32 %v386_v1 }
 0x73a   :  { %v483_v3 = vpop.eup %482 }
 0x73b   :  { %v388_v2 = vmul.f32 %v483_v3, %v383_v62 }
 0x73d   :  { %389 = vst [vmem:[#allocation10] sm:$0x3] %v388_v2 }
 0x73e   :  { %567 = shalt.err (!%p564_p10)
}
 0x73f   :  { %399 = dma.vmem_to_hbm [thread:$0]  %s397_s14, 32, %s716_s4, [#allocation6]  }
 0x740   :  { %582 = dma.done.wait [#allocation6], 32  }
 0x741   :  { %583 = vsyncadd [#allocation6], 4294967264 }
 0x742   :  { %403 = vsyncpa [#allocation5], 1 }
 0x743   :  { %404 = vsyncpa [#allocation8], 1 }
 0x744   :  { %405 = vsyncpa [#allocation6], 1 }

</bundles_post_ra>
